<compile_context>
chip_gen: v7x
topology: tpu7x:2x2x1
jax: 0.10.0
libtpu: 0.0.40
codegen_flags: <defaults>
</compile_context>

<pallas_src>
import functools

import jax
import jax.numpy as jnp
from jax.experimental import pallas as pl
from jax.experimental.pallas import tpu as pltpu


def _combined_loss_kernel(w_ref, seg_ref, pred_ref, target_ref, out_ref, *,
                          total_b, tile_b, f_steps, needs_mask):
    """One batch tile: emits (rwm_sum, energy_var_sum, length_sq_sum) partials.

    pred_ref / target_ref blocks are (TB, F*D): batch on sublanes, flattened
    (forecast, feature) on lanes (row-major reshape -- no transpose anywhere).
    w_ref   : (1, F*D)  per-lane RMM weight alpha ** (lane // D) (exact powers)
    seg_ref : (F*D, F)  block-diagonal 0/1 matrix (segment-sum over D via MXU)
    out_ref : (1, 8, 128) lane-dense slab; partials land in lanes 0..2.
    """
    p = pred_ref[...].astype(jnp.float32)      # (TB, FD)
    t = target_ref[...].astype(jnp.float32)    # (TB, FD)

    if needs_mask:
        # Zero rows past the true batch size BEFORE any arithmetic; zero rows
        # contribute exactly 0 to all three partials below.
        row = jax.lax.broadcasted_iota(jnp.int32, (tile_b, 1), 0)
        valid = (pl.program_id(0) * tile_b + row) < total_b
        p = jnp.where(valid, p, 0.0)
        t = jnp.where(valid, t, 0.0)

    w = w_ref[...]        # (1, FD)  f32, exact alpha**f per lane
    seg = seg_ref[...]    # (FD, F)  f32 0/1

    # ---- RMM partial: sum_{b,f,d} w[f] * (p - t)^2 with the weight applied
    #      as a per-lane broadcast (no extra reduction, no weight DMA per row).
    d = p - t
    rwm_partial = jnp.sum(d * d * w)

    # ---- Per-(b, f) segment sums over D via the MXU (free slot when
    #      mem-bound).  HIGHEST precision keeps full f32 accuracy.
    dn = (((1,), (0,)), ((), ()))
    pe = jax.lax.dot_general(p * p, seg, dn,
                             precision=jax.lax.Precision.HIGHEST,
                             preferred_element_type=jnp.float32)   # (TB, F)
    te = jax.lax.dot_general(t * t, seg, dn,
                             precision=jax.lax.Precision.HIGHEST,
                             preferred_element_type=jnp.float32)   # (TB, F)

    # ---- Energy partial: unbiased variance over the forecast axis per batch
    #      row, two-pass (mean-subtracted) form to avoid cancellation.
    mean_e = jnp.sum(pe, axis=1, keepdims=True) * jnp.float32(1.0 / f_steps)
    dev = pe - mean_e
    energy_partial = jnp.sum(dev * dev) * jnp.float32(1.0 / (f_steps - 1))

    # ---- Length partial: squared error of per-(b, f) L2 norms.
    dlen = jnp.sqrt(pe) - jnp.sqrt(te)
    length_partial = jnp.sum(dlen * dlen)

    # Lane-dense, unmasked (8, 128) store: partials at lanes 0 / 1 / 2.
    lane = jax.lax.broadcasted_iota(jnp.int32, (8, 128), 1)
    slab = jnp.where(lane == 0, rwm_partial,
           jnp.where(lane == 1, energy_partial,
           jnp.where(lane == 2, length_partial, jnp.float32(0.0))))
    out_ref[0] = slab


def _vmem_limit_bytes():
    """Generation-aware scoped VMEM request (v7x has 64 MiB/TC, v5e/v6e 128)."""
    cap = None
    try:
        cap = getattr(pltpu.get_tpu_info(), "vmem_capacity_bytes", None)
    except Exception:
        cap = None
    if not cap:
        cap = 64 * 1024 * 1024          # conservative default (v7x per-TC)
    return int(min(max(cap * 3 // 4, 32 * 1024 * 1024), 96 * 1024 * 1024))


def _pick_batch_tile(batch, fd, itemsize, vmem_limit):
    """Largest sublane (batch) tile whose working set fits comfortably in VMEM.

    Working set per grid step ~= 2 inputs x 2 pipeline buffers x tile
    + ~6 full-tile f32 temporaries inside the kernel body.
    """
    bytes_per_row = fd * (4 * itemsize + 6 * 4)
    budget = int(vmem_limit * 0.7)
    rows = max(8, (budget // max(bytes_per_row, 1)) // 8 * 8)
    tb = min(batch, rows)
    # Keep >= 2 grid steps when the batch allows it so the "parallel" batch
    # axis can actually split across v7x's two TensorCores.
    if batch >= 16:
        half = -(-batch // 2)            # ceil(B / 2)
        half = -(-half // 8) * 8         # round up to sublane granule
        tb = min(tb, half)
    if tb >= batch:
        return batch                     # single full-extent block
    return max(8, tb // 8 * 8)


def combined_loss(pred, target, *, alpha=0.9, forecast=8,
                  rwm_factor=1.0, energy_factor=0.01, length_factor=0.05):
    """Pallas TPU implementation of CombinedLoss.forward."""
    B, F, D = pred.shape
    assert F == forecast, "second axis must equal `forecast`"
    assert target.shape == pred.shape
    # torch.var(dim=1) is unbiased (divides by F-1); forecast=1 would be NaN.
    assert forecast >= 2, "forecast must be >= 2 (unbiased variance over dim=1)"
    assert alpha > 0.0

    FD = F * D
    # Zero-cost row-major flatten -- no transpose, no extra HBM traffic.
    pred2 = pred.reshape(B, FD)
    target2 = target.reshape(B, FD)

    # Exact host-side RMM weights, repeated per lane: w_lane[l] = alpha**(l//D).
    w_f = jnp.asarray([alpha ** k for k in range(F)], jnp.float32)
    w_lane = jnp.repeat(w_f, D).reshape(1, FD)
    # Block-diagonal 0/1 matrix for per-forecast segment sums over D.
    seg = (jnp.arange(FD, dtype=jnp.int32)[:, None] // D
           == jnp.arange(F, dtype=jnp.int32)[None, :]).astype(jnp.float32)

    itemsize = jnp.dtype(pred.dtype).itemsize
    vmem_limit = _vmem_limit_bytes()
    tile_b = _pick_batch_tile(B, FD, itemsize, vmem_limit)
    num_tiles = pl.cdiv(B, tile_b)
    needs_mask = (B % tile_b) != 0

    kernel = functools.partial(
        _combined_loss_kernel,
        total_b=B, tile_b=tile_b, f_steps=F, needs_mask=needs_mask)

    cost = pl.CostEstimate(
        flops=int(10 * B * FD + 4 * B * FD * F),
        transcendentals=int(2 * B * F),
        bytes_accessed=int(2 * B * FD * itemsize + num_tiles * 8 * 128 * 4),
    )

    partials = pl.pallas_call(
        kernel,
        out_shape=jax.ShapeDtypeStruct((num_tiles, 8, 128), jnp.float32),
        grid=(num_tiles,),
        in_specs=[
            pl.BlockSpec((1, FD), lambda i: (0, 0)),        # RMM lane weights
            pl.BlockSpec((FD, F), lambda i: (0, 0)),        # segment matrix
            pl.BlockSpec((tile_b, FD), lambda i: (i, 0)),   # pred   (TB, FD)
            pl.BlockSpec((tile_b, FD), lambda i: (i, 0)),   # target (TB, FD)
        ],
        out_specs=pl.BlockSpec((1, 8, 128), lambda i: (i, 0, 0)),
        compiler_params=pltpu.CompilerParams(
            dimension_semantics=("parallel",),
            vmem_limit_bytes=vmem_limit,
        ),
        cost_estimate=cost,
    )(w_lane, seg, pred2, target2)

    # Tiny finalize in plain JAX: sum per-tile partials, then normalize.
    sums = jnp.sum(partials[:, 0, :3], axis=0)                  # (3,)
    rwm_loss = sums[0] / jnp.float32(B * F * D)
    energy_loss = sums[1] / jnp.float32(B)
    length_loss = sums[2] / jnp.float32(B * F)
    return (rwm_factor * rwm_loss
            + energy_factor * energy_loss
            + length_factor * length_loss)


def _reference_loss(pred, target, *, alpha=0.9, forecast=8,
                    rwm_factor=1.0, energy_factor=0.01, length_factor=0.05):
    """Pure-JAX reference mirroring the PyTorch forward."""
    w = jnp.array([alpha ** k for k in range(forecast)], jnp.float32)
    rwm = jnp.mean((pred - target) ** 2 * w[None, :, None])
    pe = jnp.sum(pred ** 2, axis=-1)
    energy = jnp.mean(jnp.var(pe, axis=1, ddof=1))
    pred_len = jnp.sqrt(pe)
    gt_len = jnp.sqrt(jnp.sum(target ** 2, axis=-1))
    length = jnp.mean((pred_len - gt_len) ** 2)
    return rwm_factor * rwm + energy_factor * energy + length_factor * length


if __name__ == "__main__":
    B, F, D = 2, 8, 16  # batch=2, forecast=8, feature dim=16
    key = jax.random.PRNGKey(0)
    k_pred, k_tgt = jax.random.split(key)
    pred = jax.random.normal(k_pred, (B, F, D), dtype=jnp.float32)
    target = jax.random.normal(k_tgt, (B, F, D), dtype=jnp.float32)

    loss = combined_loss(pred, target)
    loss = jax.block_until_ready(loss)

    ref = _reference_loss(pred, target)
    assert jnp.allclose(loss, ref, rtol=1e-5, atol=1e-5), (loss, ref)
    print("KERNEL_OK")
</pallas_src>

<mosaic_0001>
module attributes {stable_mosaic.version = 11 : i64} {
  func.func @_combined_loss_kernel(%arg0: i32, %arg1: memref<1x128xf32, #tpu.memory_space<vmem>>, %arg2: memref<128x8xf32, #tpu.memory_space<vmem>>, %arg3: memref<2x128xf32, #tpu.memory_space<vmem>>, %arg4: memref<2x128xf32, #tpu.memory_space<vmem>>, %arg5: memref<1x8x128xf32, #tpu.memory_space<vmem>>) attributes {dimension_semantics = [#tpu.dimension_semantics<parallel>], iteration_bounds = array<i64: 1>, scalar_prefetch = 0 : i64, scratch_operands = 0 : i64, tpu.core_type = #tpu.core_type<tc>, window_params = [{pipeline_mode = #tpu.pipeline_mode<synchronous>, transform_indices = @transform_0, window_bounds = array<i64: 1, 128>}, {pipeline_mode = #tpu.pipeline_mode<synchronous>, transform_indices = @transform_1, window_bounds = array<i64: 128, 8>}, {transform_indices = @transform_2, window_bounds = array<i64: 2, 128>}, {transform_indices = @transform_3, window_bounds = array<i64: 2, 128>}, {transform_indices = @transform_4, window_bounds = array<i64: 1, 8, 128>}]} {
    %c0 = arith.constant 0 : index
    %c0_0 = arith.constant 0 : index
    %0 = vector.load %arg3[%c0, %c0_0] : memref<2x128xf32, #tpu.memory_space<vmem>>, vector<2x128xf32>
    %c0_1 = arith.constant 0 : index
    %c0_2 = arith.constant 0 : index
    %1 = vector.load %arg4[%c0_1, %c0_2] : memref<2x128xf32, #tpu.memory_space<vmem>>, vector<2x128xf32>
    %c0_3 = arith.constant 0 : index
    %c0_4 = arith.constant 0 : index
    %2 = vector.load %arg1[%c0_3, %c0_4] : memref<1x128xf32, #tpu.memory_space<vmem>>, vector<1x128xf32>
    %c0_5 = arith.constant 0 : index
    %c0_6 = arith.constant 0 : index
    %3 = vector.load %arg2[%c0_5, %c0_6] : memref<128x8xf32, #tpu.memory_space<vmem>>, vector<128x8xf32>
    %4 = arith.subf %0, %1 : vector<2x128xf32>
    %5 = arith.mulf %4, %4 : vector<2x128xf32>
    %6 = vector.broadcast %2 : vector<1x128xf32> to vector<2x128xf32>
    %7 = arith.mulf %5, %6 : vector<2x128xf32>
    %8 = vector.shape_cast %7 : vector<2x128xf32> to vector<1x2x128xf32>
    %cst = arith.constant dense<0.000000e+00> : vector<1xf32>
    %9 = vector.multi_reduction <add>, %8, %cst [1, 2] : vector<1x2x128xf32> to vector<1xf32>
    %10 = vector.shape_cast %9 : vector<1xf32> to vector<1x1x1xf32>
    %11 = vector.extract %10[0, 0, 0] : f32 from vector<1x1x1xf32>
    %12 = arith.mulf %0, %0 : vector<2x128xf32>
    %cst_7 = arith.constant dense<0.000000e+00> : vector<2x8xf32>
    %13 = tpu.matmul %12, %3, %cst_7 {dimension_numbers = #tpu.dot_dimension_numbers<[1], [0], [0], [1], [0, 0, 1, 1], [], []>, precision = #tpu.contract_precision<fp32>} : vector<2x128xf32>, vector<128x8xf32>, vector<2x8xf32> -> vector<2x8xf32>
    %14 = arith.mulf %1, %1 : vector<2x128xf32>
    %cst_8 = arith.constant dense<0.000000e+00> : vector<2x8xf32>
    %15 = tpu.matmul %14, %3, %cst_8 {dimension_numbers = #tpu.dot_dimension_numbers<[1], [0], [0], [1], [0, 0, 1, 1], [], []>, precision = #tpu.contract_precision<fp32>} : vector<2x128xf32>, vector<128x8xf32>, vector<2x8xf32> -> vector<2x8xf32>
    %cst_9 = arith.constant dense<0.000000e+00> : vector<2xf32>
    %16 = vector.multi_reduction <add>, %13, %cst_9 [1] : vector<2x8xf32> to vector<2xf32>
    %17 = vector.shape_cast %16 : vector<2xf32> to vector<2x1xf32>
    %cst_10 = arith.constant 1.250000e-01 : f32
    %18 = vector.broadcast %cst_10 : f32 to vector<2x1xf32>
    %19 = arith.mulf %17, %18 : vector<2x1xf32>
    %20 = vector.broadcast %19 : vector<2x1xf32> to vector<2x8xf32>
    %21 = arith.subf %13, %20 : vector<2x8xf32>
    %22 = arith.mulf %21, %21 : vector<2x8xf32>
    %23 = vector.shape_cast %22 : vector<2x8xf32> to vector<1x2x8xf32>
    %cst_11 = arith.constant dense<0.000000e+00> : vector<1xf32>
    %24 = vector.multi_reduction <add>, %23, %cst_11 [1, 2] : vector<1x2x8xf32> to vector<1xf32>
    %25 = vector.shape_cast %24 : vector<1xf32> to vector<1x1x1xf32>
    %26 = vector.extract %25[0, 0, 0] : f32 from vector<1x1x1xf32>
    %cst_12 = arith.constant 0.142857149 : f32
    %27 = arith.mulf %26, %cst_12 : f32
    %28 = math.sqrt %13 : vector<2x8xf32>
    %29 = math.sqrt %15 : vector<2x8xf32>
    %30 = arith.subf %28, %29 : vector<2x8xf32>
    %31 = arith.mulf %30, %30 : vector<2x8xf32>
    %32 = vector.shape_cast %31 : vector<2x8xf32> to vector<1x2x8xf32>
    %cst_13 = arith.constant dense<0.000000e+00> : vector<1xf32>
    %33 = vector.multi_reduction <add>, %32, %cst_13 [1, 2] : vector<1x2x8xf32> to vector<1xf32>
    %34 = vector.shape_cast %33 : vector<1xf32> to vector<1x1x1xf32>
    %35 = vector.extract %34[0, 0, 0] : f32 from vector<1x1x1xf32>
    %36 = tpu.iota {dimensions = array<i32: 1>} : vector<8x128xi32>
    %c0_i32 = arith.constant 0 : i32
    %37 = vector.broadcast %c0_i32 : i32 to vector<8x128xi32>
    %38 = arith.cmpi eq, %36, %37 : vector<8x128xi32>
    %c1_i32 = arith.constant 1 : i32
    %39 = vector.broadcast %c1_i32 : i32 to vector<8x128xi32>
    %40 = arith.cmpi eq, %36, %39 : vector<8x128xi32>
    %c2_i32 = arith.constant 2 : i32
    %41 = vector.broadcast %c2_i32 : i32 to vector<8x128xi32>
    %42 = arith.cmpi eq, %36, %41 : vector<8x128xi32>
    %cst_14 = arith.constant 0.000000e+00 : f32
    %43 = vector.broadcast %35 : f32 to vector<8x128xf32>
    %44 = vector.broadcast %cst_14 : f32 to vector<8x128xf32>
    %45 = arith.select %42, %43, %44 : vector<8x128xi1>, vector<8x128xf32>
    %46 = vector.broadcast %27 : f32 to vector<8x128xf32>
    %47 = arith.select %40, %46, %45 : vector<8x128xi1>, vector<8x128xf32>
    %48 = vector.broadcast %11 : f32 to vector<8x128xf32>
    %49 = arith.select %38, %48, %47 : vector<8x128xi1>, vector<8x128xf32>
    %c0_15 = arith.constant 0 : index
    %c0_16 = arith.constant 0 : index
    %c0_17 = arith.constant 0 : index
    %50 = vector.load %arg5[%c0_15, %c0_16, %c0_17] : memref<1x8x128xf32, #tpu.memory_space<vmem>>, vector<1x8x128xf32>
    %51 = vector.shape_cast %50 : vector<1x8x128xf32> to vector<8x128xf32>
    %52 = vector.shape_cast %49 : vector<8x128xf32> to vector<1x8x128xf32>
    tpu.vector_store %arg5[%c0_15, %c0_16, %c0_17], %52 {strides = array<i32>} : memref<1x8x128xf32, #tpu.memory_space<vmem>>, vector<1x8x128xf32>,
    return
  }
  func.func @transform_0(%arg0: i32) -> (i32, i32) {
    %c0_i32 = arith.constant 0 : i32
    %c0_i32_0 = arith.constant 0 : i32
    %c0_i32_1 = arith.constant 0 : i32
    return %c0_i32, %c0_i32_0 : i32, i32
  }
  func.func @transform_1(%arg0: i32) -> (i32, i32) {
    %c0_i32 = arith.constant 0 : i32
    %c0_i32_0 = arith.constant 0 : i32
    %c0_i32_1 = arith.constant 0 : i32
    return %c0_i32, %c0_i32_0 : i32, i32
  }
  func.func @transform_2(%arg0: i32) -> (i32, i32) {
    %c0_i32 = arith.constant 0 : i32
    %c0_i32_0 = arith.constant 0 : i32
    return %arg0, %c0_i32 : i32, i32
  }
  func.func @transform_3(%arg0: i32) -> (i32, i32) {
    %c0_i32 = arith.constant 0 : i32
    %c0_i32_0 = arith.constant 0 : i32
    return %arg0, %c0_i32 : i32, i32
  }
  func.func @transform_4(%arg0: i32) -> (i32, i32, i32) {
    %c0_i32 = arith.constant 0 : i32
    %c0_i32_0 = arith.constant 0 : i32
    %c0_i32_1 = arith.constant 0 : i32
    return %arg0, %c0_i32, %c0_i32_0 : i32, i32, i32
  }
}

</mosaic_0001>

<bundles_post_ra>
// kernel: tpu_custom_call.1
= control target key start
LH: loop header
LB: loop body
LE: loop exit
PB: predicated region body
PF: predicated region fallthrough
CT: control target
= control target key end

     0   :  { %v2382_v3 = vmov 0.0|0.0   ;;  %vm2383_vm0 = vmmov 0   ;;  %v2858_v11 = vmov 0.0   ;;  %s2851_s0 = inlined_call_operand.vmem [shape: f32[1,128], index: 0, kind: input, shape index: {}]   ;;  %s2852_s1 = inlined_call_operand.vmem [shape: f32[128,8], index: 1, kind: input, shape index: {}]   ;;  %s2853_s2 = inlined_call_operand.vmem [shape: f32[2,128], index: 2, kind: input, shape index: {}]   ;;  %s2854_s3 = inlined_call_operand.vmem [shape: f32[2,128], index: 3, kind: input, shape index: {}]   ;;  %s2855_s4 = inlined_call_operand.hbm [shape: f32[1,8,128], index: 4, kind: output, shape index: {}]  }
   0x1   :  { %v21_v0 = vld [vmem:[%s2852_s1] sm:$0xff]  ;;  %v22_v1 = vld [vmem:[%s2852_s1 + $0x8] sm:$0xff]  ;;  %v23_v2 = vld [vmem:[%s2852_s1 + $0x10] sm:$0xff]  ;;  %2036 = vmatprep.subr.bf16.mxu0 %v2382_v3  ;;  %2180 = vmatprep.subr.bf16.mxu1 %v2382_v3 }
   0x2   :  { %v59_v4 = vand.u32 4294901760, %v21_v0  ;;  %v62_v5 = vand.u32 4294901760, %v22_v1  ;;  %v2425_v6 = vld [vmem:[%s2852_s1 + $0x18] sm:$0xff]  ;;  %v65_v7 = vand.u32 4294901760, %v23_v2  ;;  %v2431_v9 = vld [vmem:[%s2852_s1 + $0x20] sm:$0xff]  ;;  %v2436_v10 = vld [vmem:[%s2852_s1 + $0x28] sm:$0xff]  ;;  %1648 = vmatprep.mubr.msk.f32.mxu0 %vm2383_vm0, %v2858_v11  ;;  %1858 = vmatprep.mubr.msk.f32.mxu1 %vm2383_vm0, %v2858_v11 }
   0x3   :  { %v68_v8 = vand.u32 4294901760, %v2425_v6  ;;  %v71_v14 = vand.u32 4294901760, %v2431_v9  ;;  %v74_v15 = vand.u32 4294901760, %v2436_v10  ;;  %v2457_v16 = vld [vmem:[%s2852_s1 + $0x30] sm:$0xff]  ;;  %v2462_v17 = vld [vmem:[%s2852_s1 + $0x38] sm:$0xff] }
   0x4   :  { %v2442_v12 = vpack.c.bf16 %v62_v5, %v59_v4 }
   0x5   :  { %v2448_v13 = vpack.c.bf16 %v68_v8, %v65_v7 }
   0x6   :  { %2038 = vmatpush3.bf16.msra.mxu0 %v2442_v12  ;;  %2182 = vmatpush3.bf16.msra.mxu1 %v2442_v12 }
   0x7   :  { %2039 = vmatprep.subr.bf16.mxu0 %v2382_v3  ;;  %2183 = vmatprep.subr.bf16.mxu1 %v2382_v3 }
   0x8   :  { %9 = vsyncpa [#allocation3], 0  ;;  %v2467_v18 = vld [vmem:[%s2853_s2] sm:$0x3]  ;;  %v2476_v20 = vpack.c.bf16 %v74_v15, %v71_v14  ;;  %v77_v21 = vand.u32 4294901760, %v2457_v16  ;;  %v80_v22 = vand.u32 4294901760, %v2462_v17  ;;  %v2508_v34 = vsub.f32 %v21_v0, %v59_v4 }
   0x9   :  { %v2472_v19 = vld [vmem:[%s2854_s3] sm:$0x3]  ;;  %v30_v24 = vld [vmem:[%s2852_s1 + $0x48] sm:$0xff]  ;;  %v57_v25 = vmul.f32 %v2467_v18, %v2467_v18  ;;  %v31_v27 = vld [vmem:[%s2852_s1 + $0x50] sm:$0xff]  ;;  %v2520_v38 = vsub.f32 %v22_v1, %v62_v5  ;;  %v2524_v40 = vsub.f32 %v23_v2, %v65_v7  ;;  %v2540_v51 = vsub.f32 %v2425_v6, %v68_v8  ;;  %s2385_s27 = smov [#allocation2]  }
   0xa   :  { %2041 = vmatpush3.bf16.msra.mxu0 %v2448_v13  ;;  %2185 = vmatpush3.bf16.msra.mxu1 %v2448_v13  ;;  %v29_v23 = vld [vmem:[%s2852_s1 + $0x40] sm:$0xff]  ;;  %v699_v26 = vmul.f32 %v2472_v19, %v2472_v19  ;;  %v2497_v28 = vpack.c.bf16 %v80_v22, %v77_v21  ;;  %v86_v30 = vand.u32 4294901760, %v30_v24  ;;  %v32_v31 = vld [vmem:[%s2852_s1 + $0x58] sm:$0xff]  ;;  %v34_v33 = vld [vmem:[%s2852_s1 + $0x68] sm:$0xff]  ;;  %v89_v41 = vand.u32 4294901760, %v31_v27  ;;  %s1403_s28 = sshll.u32 %s2385_s27, 4  ;;  %s1404_s28 = int_to_ptr.vmem [resolvable:$true] %s1403_s28 }
   0xb   :  { %2042 = vmatprep.subr.bf16.mxu0 %v2382_v3  ;;  %2186 = vmatprep.subr.bf16.mxu1 %v2382_v3  ;;  %v83_v29 = vand.u32 4294901760, %v29_v23  ;;  %v33_v32 = vld [vmem:[%s2852_s1 + $0x60] sm:$0xff]  ;;  %v35_v35 = vld [vmem:[%s2852_s1 + $0x70] sm:$0xff]  ;;  %v36_v36 = vld [vmem:[%s2852_s1 + $0x78] sm:$0xff]  ;;  %v2518_v37 = vand.u32 4294901760, %v57_v25  ;;  %v92_v42 = vand.u32 4294901760, %v32_v31  ;;  %v2543_v52 = vsub.f32 %v2431_v9, %v71_v14  ;;  %p2363_p1 = scmp.lt.s32.totalorder %s1404_s28, %s1404_s28 }
   0xc   :  { %v2522_v39 = vand.u32 4294901760, %v699_v26  ;;  %v95_v43 = vand.u32 4294901760, %v33_v32  ;;  %v98_v44 = vand.u32 4294901760, %v34_v33  ;;  %v101_v46 = vand.u32 4294901760, %v35_v35  ;;  %s2358_s29 = scalar_lea.vmem %s1404_s28, 128 }
   0xd   :  { %v2528_v45 = vpack.c.bf16 %v86_v30, %v83_v29  ;;  %v104_v47 = vand.u32 4294901760, %v36_v36  ;;  %v152_v48 = vand.u32 4294901760, %v2508_v34  ;;  %v2534_v49 = vsub.f32 %v57_v25, %v2518_v37  ;;  %p2359_p0 = scmp.ne.s32.totalorder %s1404_s28, %s2358_s29  ;;  %p2364_p2 = scmp.lt.s32.totalorder %s2358_s29, %s2358_s29 }
   0xe   :  { %2044 = vmatpush3.bf16.msra.mxu0 %v2476_v20  ;;  %2188 = vmatpush3.bf16.msra.mxu1 %v2476_v20  ;;  %v159_v50 = vand.u32 4294901760, %v2520_v38  ;;  %v2546_v53 = vsub.f32 %v699_v26, %v2522_v39  ;;  %v166_v54 = vand.u32 4294901760, %v2524_v40  ;;  %v2549_v55 = vpack.c.bf16 %v92_v42, %v89_v41 }
   0xf   :  { %2045 = vmatprep.subr.bf16.mxu0 %v2382_v3  ;;  %2189 = vmatprep.subr.bf16.mxu1 %v2382_v3  ;;  %v2551_v56 = vpack.c.bf16 %v98_v44, %v95_v43  ;;  %v2555_v57 = vpack.c.bf16 %v104_v47, %v101_v46  ;;  %v153_v58 = vsub.f32 %v2508_v34, %v152_v48  ;;  %v2857_v60 = vand.u32 4294901760, %v2534_v49  ;;  %p2365_p3 = por %p2364_p2, %p2363_p1 }
  0x10   :  { %v2559_v59 = vsub.f32 %v2436_v10, %v74_v15  ;;  %v160_v61 = vsub.f32 %v2520_v38, %v159_v50  ;;  %v173_v62 = vand.u32 4294901760, %v2540_v51  ;;  %v180_v63 = vand.u32 4294901760, %v2543_v52 }
  0x11   :  { %v2856_v0 = vand.u32 4294901760, %v2546_v53  ;;  %v167_v1 = vsub.f32 %v2524_v40, %v166_v54  ;;  %v2570_v2 = vsub.f32 %v2457_v16, %v77_v21  ;;  %v2573_v4 = vsub.f32 %v2462_v17, %v80_v22  ;;  %p2366_p4 = pnand %p2365_p3, %p2359_p0 }
  0x12   :  { %2047 = vmatpush3.bf16.msra.mxu0 %v2497_v28  ;;  %2191 = vmatpush3.bf16.msra.mxu1 %v2497_v28  ;;  %v2575_v5 = vsub.f32 %v29_v23, %v83_v29  ;;  %v2577_v6 = vsub.f32 %v30_v24, %v86_v30  ;;  %v2579_v7 = vsub.f32 %v31_v27, %v89_v41  ;;  %v187_v9 = vand.u32 4294901760, %v2559_v59 }
  0x13   :  { %2048 = vmatprep.subr.bf16.mxu0 %v2382_v3  ;;  %2192 = vmatprep.subr.bf16.mxu1 %v2382_v3  ;;  %v2581_v8 = vsub.f32 %v32_v31, %v92_v42  ;;  %v2586_v10 = vsub.f32 %v33_v32, %v95_v43  ;;  %v2588_v14 = vsub.f32 %v34_v33, %v98_v44  ;;  %v154_v16 = vand.u32 4294901760, %v153_v58 }
  0x14   :  { %v2590_v15 = vsub.f32 %v35_v35, %v101_v46  ;;  %v161_v17 = vand.u32 4294901760, %v160_v61  ;;  %v174_v21 = vsub.f32 %v2540_v51, %v173_v62  ;;  %v2595_v22 = vsub.f32 %v36_v36, %v104_v47 }
  0x15   :  { %v142_v23 = vsub.f32 %v2534_v49, %v2857_v60  ;;  %v784_v24 = vsub.f32 %v2546_v53, %v2856_v0  ;;  %v181_v25 = vsub.f32 %v2543_v52, %v180_v63  ;;  %v194_v26 = vand.u32 4294901760, %v2570_v2 }
  0x16   :  { %2050 = vmatpush3.bf16.msra.mxu0 %v2528_v45  ;;  %2194 = vmatpush3.bf16.msra.mxu1 %v2528_v45  ;;  %v201_v27 = vand.u32 4294901760, %v2573_v4  ;;  %v208_v29 = vand.u32 4294901760, %v2575_v5  ;;  %v215_v30 = vand.u32 4294901760, %v2577_v6  ;;  %v222_v31 = vand.u32 4294901760, %v2579_v7 }
  0x17   :  { %2051 = vmatprep.subr.bf16.mxu0 %v2382_v3  ;;  %2195 = vmatprep.subr.bf16.mxu1 %v2382_v3  ;;  %v229_v32 = vand.u32 4294901760, %v2581_v8  ;;  %v236_v33 = vand.u32 4294901760, %v2586_v10  ;;  %v243_v35 = vand.u32 4294901760, %v2588_v14  ;;  %v250_v36 = vand.u32 4294901760, %v2590_v15 }
  0x18   :  { %v2860_v41 = vand.u32 4294901760, %v2595_v22  ;;  %v2618_v42 = vpack.c.bf16 %v159_v50, %v152_v48  ;;  %v2620_v43 = vpack.c.bf16 %v173_v62, %v166_v54  ;;  %v2622_v44 = vpack.c.bf16 %v187_v9, %v180_v63 }
  0x19   :  { %v188_v46 = vsub.f32 %v2559_v59, %v187_v9  ;;  %v2625_v47 = vpack.c.bf16 %v201_v27, %v194_v26  ;;  %v2627_v58 = vpack.c.bf16 %v215_v30, %v208_v29  ;;  %v2629_v61 = vpack.c.bf16 %v229_v32, %v222_v31 }
  0x1a   :  { %2053 = vmatpush3.bf16.msra.mxu0 %v2549_v55  ;;  %2197 = vmatpush3.bf16.msra.mxu1 %v2549_v55  ;;  %v143_v0 = vand.u32 4294901760, %v142_v23  ;;  %v785_v60 = vand.u32 4294901760, %v784_v24  ;;  %v2631_v11 = vpack.c.bf16 %v243_v35, %v236_v33  ;;  %v2637_v48 = vpack.c.bf16 %v2860_v41, %v250_v36 }
  0x1b   :  { %2054 = vmatprep.subr.bf16.mxu0 %v2382_v3  ;;  %2198 = vmatprep.subr.bf16.mxu1 %v2382_v3  ;;  %v2061_v50 = vpack.c.bf16 %v161_v17, %v154_v16  ;;  %v168_v54 = vand.u32 4294901760, %v167_v1  ;;  %v175_v62 = vand.u32 4294901760, %v174_v21  ;;  %v182_v63 = vand.u32 4294901760, %v181_v25 }
  0x1c   :  { %v189_v9 = vand.u32 4294901760, %v188_v46  ;;  %v195_v24 = vsub.f32 %v2570_v2, %v194_v26  ;;  %v202_v41 = vsub.f32 %v2573_v4, %v201_v27  ;;  %v2861_v1 = vmov 0.0  }
  0x1d   :  { %v2064_v23 = vpack.c.bf16 %v175_v62, %v168_v54  ;;  %v209_v17 = vsub.f32 %v2575_v5, %v208_v29  ;;  %v216_v21 = vsub.f32 %v2577_v6, %v215_v30  ;;  %v223_v25 = vsub.f32 %v2579_v7, %v222_v31 }
  0x1e   :  { %2056 = vmatpush3.bf16.msra.mxu0 %v2551_v56  ;;  %2200 = vmatpush3.bf16.msra.mxu1 %v2551_v56  ;;  %v203_v16 = vand.u32 4294901760, %v202_v41  ;;  %v237_v29 = vsub.f32 %v2586_v10, %v236_v33  ;;  %v244_v31 = vsub.f32 %v2588_v14, %v243_v35  ;;  %v251_v33 = vsub.f32 %v2590_v15, %v250_v36 }
  0x1f   :  { %2057 = vmatprep.subr.bf16.mxu0 %v2382_v3  ;;  %2201 = vmatprep.subr.bf16.mxu1 %v2382_v3  ;;  %v210_v27 = vand.u32 4294901760, %v209_v17  ;;  %v217_v46 = vand.u32 4294901760, %v216_v21  ;;  %v224_v41 = vand.u32 4294901760, %v223_v25  ;;  %vm1341_vm1 = vcmask 58368  }
  0x20   :  { %v238_v62 = vand.u32 4294901760, %v237_v29  ;;  %vm46_vm6 = vcmask 1041408  }
  0x21   :  { %v2073_v30 = vpack.c.bf16 %v217_v46, %v210_v27 }
  0x22   :  { %2059 = vmatpush3.bf16.msra.mxu0 %v2555_v57  ;;  %2203 = vmatpush3.bf16.msra.mxu1 %v2555_v57 }
  0x23   :  { %2060 = vmatprep.subr.bf16.mxu0 %v2382_v3  ;;  %2204 = vmatprep.subr.bf16.mxu1 %v2382_v3 }
  0x25   :  { %1649 = vmatmul.mubr.f32.vlgmr.msra.gmra.mrb[0].mxu0 %v143_v0  ;;  %1859 = vmatmul.mubr.f32.vlgmr.msra.gmra.mrb[0].mxu1 %v785_v60  ;;  %v2067_v60 = vpack.c.bf16 %v189_v9, %v182_v63  ;;  %v196_v0 = vand.u32 4294901760, %v195_v24  ;;  %v245_v63 = vand.u32 4294901760, %v244_v31  ;;  %v2862_v9 = vand.u32 4294901760, %v2595_v22 }
  0x26   :  { %2062 = vmatpush3.bf16.msra.mxu0 %v2061_v50  ;;  %2206 = vmatpush3.bf16.msra.mxu1 %v2061_v50  ;;  %v230_v50 = vsub.f32 %v2581_v8, %v229_v32  ;;  %v252_v24 = vand.u32 4294901760, %v251_v33 }
  0x27   :  { %2063 = vmatprep.subr.bf16.mxu0 %v2382_v3  ;;  %2207 = vmatprep.subr.bf16.mxu1 %v2382_v3  ;;  %v2070_v26 = vpack.c.bf16 %v203_v16, %v196_v0  ;;  %v2079_v35 = vpack.c.bf16 %v245_v63, %v238_v62  ;;  %v2085_v0 = vpack.c.bf16 %v2520_v38, %v2508_v34 }
  0x28   :  { %1683 = vmatprep.mubr.msk.f32.mxu0 %vm2383_vm0, %v2861_v1  ;;  %1893 = vmatprep.mubr.msk.f32.mxu1 %vm2383_vm0, %v2861_v1  ;;  %v231_v54 = vand.u32 4294901760, %v230_v50  ;;  %v2088_v16 = vpack.c.bf16 %v2540_v51, %v2524_v40  ;;  %v2091_v34 = vpack.c.bf16 %v2559_v59, %v2543_v52  ;;  %v2094_v38 = vpack.c.bf16 %v2573_v4, %v2570_v2 }
  0x29   :  { %v2097_v40 = vpack.c.bf16 %v2577_v6, %v2575_v5  ;;  %v2100_v51 = vpack.c.bf16 %v2581_v8, %v2579_v7  ;;  %v2103_v52 = vpack.c.bf16 %v2588_v14, %v2586_v10  ;;  %v2106_v59 = vpack.c.bf16 %v2595_v22, %v2590_v15  ;;  %v1411_v6 = vld [vmem:[%s2851_s0] ss:$0 sm:$0xff] }
  0x2a   :  { %2065 = vmatpush3.bf16.msra.mxu0 %v2064_v23  ;;  %2209 = vmatpush3.bf16.msra.mxu1 %v2064_v23  ;;  %v2076_v32 = vpack.c.bf16 %v231_v54, %v224_v41  ;;  %v258_v23 = vsub.f32 %v2595_v22, %v2862_v9  ;;  %v2863_v2 = vand.u32 4294901760, %v2534_v49  ;;  %v2864_v4 = vand.u32 4294901760, %v2546_v53 }
  0x2b   :  { %2066 = vmatprep.subr.bf16.mxu0 %v2382_v3  ;;  %2210 = vmatprep.subr.bf16.mxu1 %v2382_v3 }
  0x2e   :  { %2068 = vmatpush3.bf16.msra.mxu0 %v2067_v60  ;;  %2212 = vmatpush3.bf16.msra.mxu1 %v2067_v60  ;;  %v259_v60 = vand.u32 4294901760, %v258_v23  ;;  %v1385_v23 = vlaneseq }
  0x2f   :  { %2069 = vmatprep.subr.bf16.mxu0 %v2382_v3  ;;  %2213 = vmatprep.subr.bf16.mxu1 %v2382_v3 }
  0x30   :  { %v2082_v36 = vpack.c.bf16 %v259_v60, %v252_v24 }
  0x32   :  { %2071 = vmatpush3.bf16.msra.mxu0 %v2070_v26  ;;  %2215 = vmatpush3.bf16.msra.mxu1 %v2070_v26 }
  0x33   :  { %2072 = vmatprep.subr.bf16.mxu0 %v2382_v3  ;;  %2216 = vmatprep.subr.bf16.mxu1 %v2382_v3 }
  0x36   :  { %2074 = vmatpush3.bf16.msra.mxu0 %v2073_v30  ;;  %2218 = vmatpush3.bf16.msra.mxu1 %v2073_v30 }
  0x37   :  { %2075 = vmatprep.subr.bf16.mxu0 %v2382_v3  ;;  %2219 = vmatprep.subr.bf16.mxu1 %v2382_v3 }
  0x3a   :  { %2077 = vmatpush3.bf16.msra.mxu0 %v2076_v32  ;;  %2221 = vmatpush3.bf16.msra.mxu1 %v2076_v32 }
  0x3b   :  { %2078 = vmatprep.subr.bf16.mxu0 %v2382_v3  ;;  %2222 = vmatprep.subr.bf16.mxu1 %v2382_v3 }
  0x3e   :  { %2080 = vmatpush3.bf16.msra.mxu0 %v2079_v35  ;;  %2224 = vmatpush3.bf16.msra.mxu1 %v2079_v35  ;;  %v1386_v35 = vand.u32 127, %v1385_v23 }
  0x3f   :  { %2081 = vmatprep.subr.bf16.mxu0 %v2382_v3  ;;  %2225 = vmatprep.subr.bf16.mxu1 %v2382_v3 }
  0x40   :  { %vm1389_vm7 = vcmp.eq.s32.totalorder %v1386_v35, 2  ;;  %vm1388_vm8 = vcmp.eq.s32.totalorder %v1386_v35, 1  ;;  %vm1387_vm9 = vcmp.eq.s32.totalorder %v1386_v35, 0 }
  0x42   :  { %2083 = vmatpush3.bf16.msra.mxu0 %v2082_v36  ;;  %2227 = vmatpush3.bf16.msra.mxu1 %v2082_v36 }
  0x43   :  { %2084 = vmatprep.subr.bf16.mxu0 %v2382_v3  ;;  %2228 = vmatprep.subr.bf16.mxu1 %v2382_v3 }
  0x45   :  { %1684 = vmatmul.mubr.f32.vlgmr.msra.gmra.mrb[0].mxu0 %v2518_v37  ;;  %1894 = vmatmul.mubr.f32.vlgmr.msra.gmra.mrb[0].mxu1 %v2522_v39 }
  0x46   :  { %2086 = vmatpush3.bf16.msra.mxu0 %v2085_v0  ;;  %2230 = vmatpush3.bf16.msra.mxu1 %v2085_v0 }
  0x47   :  { %2087 = vmatprep.subr.bf16.mxu0 %v2382_v3  ;;  %2231 = vmatprep.subr.bf16.mxu1 %v2382_v3 }
  0x48   :  { %1718 = vmatprep.mubr.msk.f32.mxu0 %vm2383_vm0, %v2861_v1  ;;  %1928 = vmatprep.mubr.msk.f32.mxu1 %vm2383_vm0, %v2861_v1 }
  0x4a   :  { %2089 = vmatpush3.bf16.msra.mxu0 %v2088_v16  ;;  %2233 = vmatpush3.bf16.msra.mxu1 %v2088_v16 }
  0x4b   :  { %2090 = vmatprep.subr.bf16.mxu0 %v2382_v3  ;;  %2234 = vmatprep.subr.bf16.mxu1 %v2382_v3 }
  0x4e   :  { %2092 = vmatpush3.bf16.msra.mxu0 %v2091_v34  ;;  %2236 = vmatpush3.bf16.msra.mxu1 %v2091_v34 }
  0x4f   :  { %2093 = vmatprep.subr.bf16.mxu0 %v2382_v3  ;;  %2237 = vmatprep.subr.bf16.mxu1 %v2382_v3 }
  0x52   :  { %2095 = vmatpush3.bf16.msra.mxu0 %v2094_v38  ;;  %2239 = vmatpush3.bf16.msra.mxu1 %v2094_v38 }
  0x53   :  { %2096 = vmatprep.subr.bf16.mxu0 %v2382_v3  ;;  %2240 = vmatprep.subr.bf16.mxu1 %v2382_v3 }
  0x56   :  { %2098 = vmatpush3.bf16.msra.mxu0 %v2097_v40  ;;  %2242 = vmatpush3.bf16.msra.mxu1 %v2097_v40 }
  0x57   :  { %2099 = vmatprep.subr.bf16.mxu0 %v2382_v3  ;;  %2243 = vmatprep.subr.bf16.mxu1 %v2382_v3 }
  0x5a   :  { %2101 = vmatpush3.bf16.msra.mxu0 %v2100_v51  ;;  %2245 = vmatpush3.bf16.msra.mxu1 %v2100_v51 }
  0x5b   :  { %2102 = vmatprep.subr.bf16.mxu0 %v2382_v3  ;;  %2246 = vmatprep.subr.bf16.mxu1 %v2382_v3 }
  0x5e   :  { %2104 = vmatpush3.bf16.msra.mxu0 %v2103_v52  ;;  %2248 = vmatpush3.bf16.msra.mxu1 %v2103_v52 }
  0x5f   :  { %2105 = vmatprep.subr.bf16.mxu0 %v2382_v3  ;;  %2249 = vmatprep.subr.bf16.mxu1 %v2382_v3 }
  0x62   :  { %2107 = vmatpush3.bf16.msra.mxu0 %v2106_v59  ;;  %2251 = vmatpush3.bf16.msra.mxu1 %v2106_v59 }
  0x63   :  { %2108 = vmatprep.subr.bf16.mxu0 %v2382_v3  ;;  %2252 = vmatprep.subr.bf16.mxu1 %v2382_v3 }
  0x65   :  { %1719 = vmatmul.mubr.f32.vlgmr.msra.gmra.mrb[0].mxu0 %v2534_v49  ;;  %1929 = vmatmul.mubr.f32.vlgmr.msra.gmra.mrb[0].mxu1 %v2546_v53 }
  0x66   :  { %2110 = vmatpush3.bf16.msra.mxu0 %v2442_v12  ;;  %2254 = vmatpush3.bf16.msra.mxu1 %v2442_v12 }
  0x67   :  { %2111 = vmatprep.subr.bf16.mxu0 %v2382_v3  ;;  %2255 = vmatprep.subr.bf16.mxu1 %v2382_v3 }
  0x68   :  { %1753 = vmatprep.mubr.msk.f32.mxu0 %vm2383_vm0, %v2861_v1  ;;  %1963 = vmatprep.mubr.msk.f32.mxu1 %vm2383_vm0, %v2861_v1 }
  0x6a   :  { %2113 = vmatpush3.bf16.msra.mxu0 %v2448_v13  ;;  %2257 = vmatpush3.bf16.msra.mxu1 %v2448_v13 }
  0x6b   :  { %2114 = vmatprep.subr.bf16.mxu0 %v2382_v3  ;;  %2258 = vmatprep.subr.bf16.mxu1 %v2382_v3 }
  0x6e   :  { %2116 = vmatpush3.bf16.msra.mxu0 %v2476_v20  ;;  %2260 = vmatpush3.bf16.msra.mxu1 %v2476_v20 }
  0x6f   :  { %2117 = vmatprep.subr.bf16.mxu0 %v2382_v3  ;;  %2261 = vmatprep.subr.bf16.mxu1 %v2382_v3 }
  0x72   :  { %2119 = vmatpush3.bf16.msra.mxu0 %v2497_v28  ;;  %2263 = vmatpush3.bf16.msra.mxu1 %v2497_v28 }
  0x73   :  { %2120 = vmatprep.subr.bf16.mxu0 %v2382_v3  ;;  %2264 = vmatprep.subr.bf16.mxu1 %v2382_v3 }
  0x76   :  { %2122 = vmatpush3.bf16.msra.mxu0 %v2528_v45  ;;  %2266 = vmatpush3.bf16.msra.mxu1 %v2528_v45 }
  0x77   :  { %2123 = vmatprep.subr.bf16.mxu0 %v2382_v3  ;;  %2267 = vmatprep.subr.bf16.mxu1 %v2382_v3 }
  0x7a   :  { %2125 = vmatpush3.bf16.msra.mxu0 %v2549_v55  ;;  %2269 = vmatpush3.bf16.msra.mxu1 %v2549_v55 }
  0x7b   :  { %2126 = vmatprep.subr.bf16.mxu0 %v2382_v3  ;;  %2270 = vmatprep.subr.bf16.mxu1 %v2382_v3 }
  0x7e   :  { %2128 = vmatpush3.bf16.msra.mxu0 %v2551_v56  ;;  %2272 = vmatpush3.bf16.msra.mxu1 %v2551_v56 }
  0x7f   :  { %2129 = vmatprep.subr.bf16.mxu0 %v2382_v3  ;;  %2273 = vmatprep.subr.bf16.mxu1 %v2382_v3 }
  0x82   :  { %2131 = vmatpush3.bf16.msra.mxu0 %v2555_v57  ;;  %2275 = vmatpush3.bf16.msra.mxu1 %v2555_v57 }
  0x83   :  { %2132 = vmatprep.subr.bf16.mxu0 %v2382_v3  ;;  %2276 = vmatprep.subr.bf16.mxu1 %v2382_v3 }
  0x85   :  { %1754 = vmatmul.mubr.f32.vlgmr.msra.gmra.mrb[0].mxu0 %v2863_v2  ;;  %1964 = vmatmul.mubr.f32.vlgmr.msra.gmra.mrb[0].mxu1 %v2864_v4 }
  0x86   :  { %2134 = vmatpush3.bf16.msra.mxu0 %v2618_v42  ;;  %2278 = vmatpush3.bf16.msra.mxu1 %v2618_v42 }
  0x87   :  { %2135 = vmatprep.subr.bf16.mxu0 %v2382_v3  ;;  %2279 = vmatprep.subr.bf16.mxu1 %v2382_v3 }
  0x88   :  { %1788 = vmatprep.mubr.msk.f32.mxu0 %vm2383_vm0, %v2861_v1  ;;  %1998 = vmatprep.mubr.msk.f32.mxu1 %vm2383_vm0, %v2861_v1 }
  0x8a   :  { %2137 = vmatpush3.bf16.msra.mxu0 %v2620_v43  ;;  %2281 = vmatpush3.bf16.msra.mxu1 %v2620_v43 }
  0x8b   :  { %2138 = vmatprep.subr.bf16.mxu0 %v2382_v3  ;;  %2282 = vmatprep.subr.bf16.mxu1 %v2382_v3 }
  0x8e   :  { %2140 = vmatpush3.bf16.msra.mxu0 %v2622_v44  ;;  %2284 = vmatpush3.bf16.msra.mxu1 %v2622_v44 }
  0x8f   :  { %2141 = vmatprep.subr.bf16.mxu0 %v2382_v3  ;;  %2285 = vmatprep.subr.bf16.mxu1 %v2382_v3 }
  0x92   :  { %2143 = vmatpush3.bf16.msra.mxu0 %v2625_v47  ;;  %2287 = vmatpush3.bf16.msra.mxu1 %v2625_v47 }
  0x93   :  { %2144 = vmatprep.subr.bf16.mxu0 %v2382_v3  ;;  %2288 = vmatprep.subr.bf16.mxu1 %v2382_v3 }
  0x96   :  { %2146 = vmatpush3.bf16.msra.mxu0 %v2627_v58  ;;  %2290 = vmatpush3.bf16.msra.mxu1 %v2627_v58 }
  0x97   :  { %2147 = vmatprep.subr.bf16.mxu0 %v2382_v3  ;;  %2291 = vmatprep.subr.bf16.mxu1 %v2382_v3 }
  0x9a   :  { %2149 = vmatpush3.bf16.msra.mxu0 %v2629_v61  ;;  %2293 = vmatpush3.bf16.msra.mxu1 %v2629_v61 }
  0x9b   :  { %2150 = vmatprep.subr.bf16.mxu0 %v2382_v3  ;;  %2294 = vmatprep.subr.bf16.mxu1 %v2382_v3 }
  0x9e   :  { %2152 = vmatpush3.bf16.msra.mxu0 %v2631_v11  ;;  %2296 = vmatpush3.bf16.msra.mxu1 %v2631_v11 }
  0x9f   :  { %2153 = vmatprep.subr.bf16.mxu0 %v2382_v3  ;;  %2297 = vmatprep.subr.bf16.mxu1 %v2382_v3 }
  0xa2   :  { %2155 = vmatpush3.bf16.msra.mxu0 %v2637_v48  ;;  %2299 = vmatpush3.bf16.msra.mxu1 %v2637_v48 }
  0xa3   :  { %2156 = vmatprep.subr.bf16.mxu0 %v2382_v3  ;;  %2300 = vmatprep.subr.bf16.mxu1 %v2382_v3 }
  0xa5   :  { %1789 = vmatmul.mubr.f32.vlgmr.msra.gmra.mrb[0].mxu0 %v2518_v37  ;;  %1999 = vmatmul.mubr.f32.vlgmr.msra.gmra.mrb[0].mxu1 %v2522_v39 }
  0xa6   :  { %2158 = vmatpush3.bf16.msra.mxu0 %v2442_v12  ;;  %2302 = vmatpush3.bf16.msra.mxu1 %v2442_v12 }
  0xa7   :  { %2159 = vmatprep.subr.bf16.mxu0 %v2382_v3  ;;  %2303 = vmatprep.subr.bf16.mxu1 %v2382_v3 }
  0xa8   :  { %1823 = vmatprep.mubr.msk.f32.mxu0 %vm2383_vm0, %v2861_v1  ;;  %2033 = vmatprep.mubr.msk.f32.mxu1 %vm2383_vm0, %v2861_v1 }
  0xaa   :  { %2161 = vmatpush3.bf16.msra.mxu0 %v2448_v13  ;;  %2305 = vmatpush3.bf16.msra.mxu1 %v2448_v13 }
  0xab   :  { %2162 = vmatprep.subr.bf16.mxu0 %v2382_v3  ;;  %2306 = vmatprep.subr.bf16.mxu1 %v2382_v3 }
  0xae   :  { %2164 = vmatpush3.bf16.msra.mxu0 %v2476_v20  ;;  %2308 = vmatpush3.bf16.msra.mxu1 %v2476_v20 }
  0xaf   :  { %2165 = vmatprep.subr.bf16.mxu0 %v2382_v3  ;;  %2309 = vmatprep.subr.bf16.mxu1 %v2382_v3 }
  0xb2   :  { %2167 = vmatpush3.bf16.msra.mxu0 %v2497_v28  ;;  %2311 = vmatpush3.bf16.msra.mxu1 %v2497_v28 }
  0xb3   :  { %2168 = vmatprep.subr.bf16.mxu0 %v2382_v3  ;;  %2312 = vmatprep.subr.bf16.mxu1 %v2382_v3 }
  0xb6   :  { %2170 = vmatpush3.bf16.msra.mxu0 %v2528_v45  ;;  %2314 = vmatpush3.bf16.msra.mxu1 %v2528_v45 }
  0xb7   :  { %2171 = vmatprep.subr.bf16.mxu0 %v2382_v3  ;;  %2315 = vmatprep.subr.bf16.mxu1 %v2382_v3 }
  0xba   :  { %2173 = vmatpush3.bf16.msra.mxu0 %v2549_v55  ;;  %2317 = vmatpush3.bf16.msra.mxu1 %v2549_v55 }
  0xbb   :  { %2174 = vmatprep.subr.bf16.mxu0 %v2382_v3  ;;  %2318 = vmatprep.subr.bf16.mxu1 %v2382_v3 }
  0xbe   :  { %2176 = vmatpush3.bf16.msra.mxu0 %v2551_v56  ;;  %2320 = vmatpush3.bf16.msra.mxu1 %v2551_v56 }
  0xbf   :  { %2177 = vmatprep.subr.bf16.mxu0 %v2382_v3  ;;  %2321 = vmatprep.subr.bf16.mxu1 %v2382_v3 }
  0xc2   :  { %2179 = vmatpush3.bf16.msra.mxu0 %v2555_v57  ;;  %2323 = vmatpush3.bf16.msra.mxu1 %v2555_v57 }
  0xc5   :  { %1824 = vmatmul.mubr.f32.vlgmr.msra.gmra.mrb[0].mxu0 %v2518_v37  ;;  %2034 = vmatmul.mubr.f32.vlgmr.msra.gmra.mrb[0].mxu1 %v2522_v39  ;;  %v37_v37 = vsub.f32 %v2467_v18, %v2472_v19 }
  0xc7   :  { %v38_v7 = vmul.f32 %v37_v37, %v37_v37 }
  0xc9   :  { %v45_v14 = vmul.f32 %v1411_v6, %v38_v7 }
  0xcb   :  { %v47_v15 = vsel %vm46_vm6, %v45_v14, 0.0 }
 0x198   :  { %v695_v11 = vpop.f32.mrb[0].mxu0  ;;  %v1337_v12 = vpop.f32.mrb[0].mxu1 }
 0x199   :  { %2354 = vrsqrt.f32 %v695_v11  ;;  %v1825_v13 = vpop.f32.mrb[1].mxu0  ;;  %v2035_v20 = vpop.f32.mrb[1].mxu1  ;;  %v1342_v28 = vsel %vm1341_vm1, %v695_v11, 0.0  ;;  %vm1361_vm2 = vcmp.eq.f32.partialorder %v695_v11, inf  ;;  %vm1363_vm3 = vcmp.eq.f32.partialorder %v695_v11, 0.0 }
 0x19a   :  { %2356 = vrsqrt.f32 %v1337_v12  ;;  %1343 = vadd.xlane.f32.xlu0 %v1342_v28  ;;  %v1364_v53 = vand.u32 2147483648, %v695_v11  ;;  %vm1368_vm4 = vcmp.eq.f32.partialorder %v1337_v12, inf  ;;  %v1371_v56 = vand.u32 2147483648, %v1337_v12 }
 0x19b   :  { %vm1370_vm5 = vcmp.eq.f32.partialorder %v1337_v12, 0.0 }
 0x19e   :  { %48 = vadd.xlane.f32.xlu0 %v47_v15 }
 0x1a3   :  { %v2355_v45 = vpop.eup %2354 }
 0x1a4   :  { %v2357_v3 = vpop.eup %2356  ;;  %v1360_v49 = vmul.f32 %v2355_v45, %v695_v11 }
 0x1a5   :  { %v1367_v55 = vmul.f32 %v2357_v3, %v1337_v12 }
 0x1a6   :  { %v1362_v39 = vsel %vm1361_vm2, %v695_v11, %v1360_v49 }
 0x1a7   :  { %v1365_v57 = vsel %vm1363_vm3, %v1364_v53, %v1362_v39  ;;  %v1369_v5 = vsel %vm1368_vm4, %v1337_v12, %v1367_v55 }
 0x1a8   :  { %v1372_v8 = vsel %vm1370_vm5, %v1371_v56, %v1369_v5 }
 0x1a9   :  { %v1373_v10 = vsub.f32 %v1365_v57, %v1372_v8 }
 0x1ab   :  { %v1374_v44 = vmul.f32 %v1373_v10, %v1373_v10 }
 0x1ad   :  { %v1375_v47 = vsel %vm1341_vm1, %v1374_v44, 0.0 }
 0x227   :  { %v1344_v22 = vpop.xlane.xlu0 %1343 }
 0x228   :  { %v1345_v42 = vmul.f32 0.125, %v1344_v22 }
 0x22a   :  { %v1346_v18 = vsub.f32 %v695_v11, %v1345_v42 }
 0x22b   :  { %v49_v58 = vpop.xlane.xlu0 %48 }
 0x22c   :  { %v1347_v19 = vmul.f32 %v1346_v18, %v1346_v18  ;;  %v50_v61 = vrot.slane %v49_v58, 4 }
 0x22e   :  { %v1348_v43 = vsel %vm1341_vm1, %v1347_v19, 0.0  ;;  %v51_v48 = vadd.f32 %v50_v61, %v49_v58 }
 0x22f   :  { %1349 = vadd.xlane.f32.xlu1 %v1348_v43 }
 0x230   :  { %v52_v1 = vrot.slane %v51_v48, 2 }
 0x232   :  { %v53_v17 = vadd.f32 %v52_v1, %v51_v48 }
 0x233   :  { %1376 = vadd.xlane.f32.xlu1 %v1375_v47 }
 0x234   :  { %v54_v21 = vrot.slane %v53_v17, 1 }
 0x236   :  { %v55_v25 = vadd.f32 %v54_v21, %v53_v17 }
 0x238   :  { %2344 = vpush %v55_v25 }
 0x269   :  { %s2345_s0 = spop %2344 }
 0x26a   :  { %v1394_v0 = vstv %s2345_s0 }
 0x2bc   :  { %v1350_v26 = vpop.xlane.xlu1 %1349 }
 0x2bd   :  { %v1351_v27 = vrot.slane %v1350_v26, 4 }
 0x2bf   :  { %v1352_v46 = vadd.f32 %v1351_v27, %v1350_v26 }
 0x2c0   :  { %v1377_v50 = vpop.xlane.xlu1 %1376 }
 0x2c1   :  { %v1353_v29 = vrot.slane %v1352_v46, 2  ;;  %v1378_v30 = vrot.slane %v1377_v50, 4 }
 0x2c3   :  { %v1379_v41 = vadd.f32 %v1378_v30, %v1377_v50  ;;  %v1354_v54 = vadd.f32 %v1353_v29, %v1352_v46 }
 0x2c5   :  { %v1380_v31 = vrot.slane %v1379_v41, 2  ;;  %v1355_v62 = vrot.slane %v1354_v54, 1 }
 0x2c7   :  { %v1381_v32 = vadd.f32 %v1380_v31, %v1379_v41  ;;  %v1356_v63 = vadd.f32 %v1355_v62, %v1354_v54 }
 0x2c9   :  { %2346 = vpush %v1356_v63  ;;  %v1382_v33 = vrot.slane %v1381_v32, 1 }
 0x2cb   :  { %v1383_v9 = vadd.f32 %v1382_v33, %v1381_v32 }
 0x2cd   :  { %2348 = vpush %v1383_v9 }
 0x2fa   :  { %s2347_s24 = spop %2346 }
 0x2fb   :  { %s1358_s25 = smul.f32 0.14285715, %s2347_s24 }
 0x2fd   :  { %v1392_v60 = vstv %s1358_s25 }
 0x2fe   :  { %s2349_s26 = spop %2348 }
 0x2ff   :  { %v1390_v24 = vstv %s2349_s26 }
 0x300   :  { %v1391_v36 = vsel %vm1389_vm7, %v1390_v24, 0.0 }
 0x301   :  { %v1393_v16 = vsel %vm1388_vm8, %v1392_v60, %v1391_v36 }
 0x302   :  { %v1395_v34 = vsel %vm1387_vm9, %v1394_v0, %v1393_v16 }
 0x303   :  { %1396 = vst [vmem:[#allocation2] sm:$0xff] %v1395_v34 }
 0x304   :  { %2369 = shalt.err (!%p2366_p4)
}
 0x305   :  { %s2370_s6 = scalar_lea.hbm %s2855_s4, 128 }
 0x306   :  { %p2371_p5 = scmp.ne.s32.totalorder %s2855_s4, %s2370_s6  ;;  %p2374_p6 = scmp.lt.u32.totalorder %s2370_s6, %s2855_s4 }
 0x308   :  { %p2376_p7 = pnand %p2374_p6, %p2371_p5 }
 0x30a   :  { %2379 = shalt.err (!%p2376_p7)
}
 0x30b   :  { %1406 = dma.vmem_to_hbm [thread:$0]  %s1404_s28, 128, %s2855_s4, [#allocation3]  }
 0x30c   :  { %2380 = dma.done.wait [#allocation3], 128  }
 0x30d   :  { %2381 = vsyncadd [#allocation3], 4294967168 }
 0x30e   :  { %1410 = vsyncpa [#allocation3], 1 }

</bundles_post_ra>
